<compile_context>
chip_gen: v7x
topology: tpu7x:2x2x1
jax: 0.10.0
libtpu: 0.0.40
codegen_flags: <defaults>
</compile_context>

<pallas_src>
import functools

import jax
import jax.numpy as jnp
from jax import lax
from jax.experimental import pallas as pl
from jax.experimental.pallas import tpu as pltpu

NUM_CLASSES = 7


def _cmmd_kernel(total_ref, labc_ref, labr_ref, out_ref, gram_acc, sq_acc, *,
                 bs, bt, d, td, kernel_mul, kernel_num, fix_sigma):
    n = bs + bt
    k = pl.program_id(0)

    @pl.when(k == 0)
    def _init():
        gram_acc[...] = jnp.zeros_like(gram_acc)
        sq_acc[...] = jnp.zeros_like(sq_acc)

    t = total_ref[...]                                   # (n, td) caller dtype
    if d % td != 0:
        # Ragged tail tile: zero the out-of-bounds lanes.  Branch-free — for
        # full tiles `limit >= td` so the mask is all-true.
        limit = d - k * td
        col = lax.broadcasted_iota(jnp.int32, (n, td), 1)
        t = jnp.where(col < limit, t, jnp.zeros_like(t))

    # Partial Gram over this D-tile; contract dim 1 of both operands so no
    # transpose is materialized, accumulate in f32 on the MXU.
    gram_acc[...] += lax.dot_general(
        t, t, dimension_numbers=(((1,), (1,)), ((), ())),
        preferred_element_type=jnp.float32)

    # Incremental squared norms — VPU/XLU filler under the matmul + DMA.
    tf = t.astype(jnp.float32)
    sq_acc[...] += jnp.sum(tf * tf, axis=1, keepdims=True)

    @pl.when(k == pl.num_programs(0) - 1)
    def _finalize():
        gram = gram_acc[...]                              # (n, n) f32
        sq_col = sq_acc[...]                              # (n, 1) f32

        # (1, n) row form of the squared norms from the Gram diagonal
        # (single masked sublane reduce; avoids a vector transpose).
        r2 = lax.broadcasted_iota(jnp.int32, (n, n), 0)
        c2 = lax.broadcasted_iota(jnp.int32, (n, n), 1)
        sq_row = jnp.sum(jnp.where(r2 == c2, gram, 0.0), axis=0, keepdims=True)

        # ||xi - xj||^2 via the Gram identity; clamp cancellation error.
        l2 = jnp.maximum(sq_col + sq_row - 2.0 * gram, 0.0)

        if fix_sigma:  # truthiness matches the PyTorch `if fix_sigma:`
            bandwidth = jnp.float32(fix_sigma)
        else:
            bandwidth = jnp.sum(l2) / jnp.float32(n * n - n)
        bandwidth = bandwidth / jnp.float32(kernel_mul ** (kernel_num // 2))

        # Label "gram" blocks via integer equality on the VPU (replaces the
        # three K=7 one-hot matmuls), fused with the per-block mean scales
        # (+1/bs^2, +1/bt^2, -2/(bs*bt)).
        eq = (labc_ref[...] == labr_ref[...]).astype(jnp.float32)   # (n, n)
        ri = lax.broadcasted_iota(jnp.int32, (n, 1), 0)
        ci = lax.broadcasted_iota(jnp.int32, (1, n), 1)
        src_r = (ri < bs).astype(jnp.float32)
        src_c = (ci < bs).astype(jnp.float32)
        tgt_r = 1.0 - src_r
        tgt_c = 1.0 - src_c
        w = ((src_r * src_c) * jnp.float32(1.0 / (bs * bs))
             + (tgt_r * tgt_c) * jnp.float32(1.0 / (bt * bt))
             - (src_r * tgt_c) * jnp.float32(2.0 / (bs * bt)))
        ew = eq * w

        # Multi-bandwidth Gaussian kernel sum, fused with ew.
        if kernel_mul == 2.0:
            # One EUP exp at the widest bandwidth, remaining terms by repeated
            # squaring: exp(-x/(b*2^(i-1))) == exp(-x/(b*2^i))^2.
            widest = bandwidth * jnp.float32(kernel_mul ** (kernel_num - 1))
            term = jnp.exp(l2 * (-1.0 / widest))
            acc = term * ew
            for _ in range(kernel_num - 1):
                term = term * term
                acc = acc + term * ew
        else:
            acc = None
            for i in range(kernel_num):
                neg_inv = -1.0 / (bandwidth * jnp.float32(kernel_mul ** i))
                e = jnp.exp(l2 * neg_inv) * ew
                acc = e if acc is None else acc + e

        out_ref[0, 0] = jnp.sum(acc)


def cmmd_loss(source, target, s_label, t_label,
              kernel_mul=2.0, kernel_num=5, fix_sigma=None,
              cast_to_bf16=False, tile_d=None):
    """Pallas implementation of CMMD_loss.forward."""
    bs = int(source.shape[0])
    bt = int(target.shape[0])
    n = bs + bt
    d = int(source.shape[1])

    # Free layout plumbing in XLA: concat rows, pack int labels both ways.
    total = jnp.concatenate([source, target], axis=0)              # (n, d)
    if cast_to_bf16 and total.dtype == jnp.float32:
        # Optional: halves HBM traffic of the only large input (MXU is
        # full-rate bf16 on all generations); keep off by default for exact
        # agreement with the f32 reference.
        total = total.astype(jnp.bfloat16)
    labels = jnp.concatenate(
        [jnp.reshape(s_label, (bs,)), jnp.reshape(t_label, (bt,))]
    ).astype(jnp.int32)
    lab_col = labels.reshape(n, 1)
    lab_row = labels.reshape(1, n)

    itemsize = jnp.dtype(total.dtype).itemsize

    # Per-generation VMEM budget (v7x: 64 MiB/TC -> ~48 MiB usable;
    # v5e/v6e: 128 MiB -> capped at ~96 MiB usable).
    try:
        vmem_cap = int(pltpu.get_tpu_info().vmem_capacity_bytes)
    except Exception:  # pragma: no cover - fallback if query unavailable
        vmem_cap = 64 << 20
    budget = min(vmem_cap * 3 // 4, 100 << 20)

    # Fixed VMEM: (n,n) Gram accumulator, (n,1) sq-norm scratch, ~5 (n,n) f32
    # finalize temporaries, slack for compiler-internal scratch.
    fixed = n * n * 4 + n * 4 + 5 * n * n * 4 + (2 << 20)

    if tile_d is not None:
        td = int(tile_d)                 # explicit override (testing / tuning)
    else:
        # Largest double-buffered (n, td) slab that fits the budget; take the
        # full D as one block whenever possible (no padding either way — a
        # ragged tail tile is masked in-kernel).
        max_td = (budget - fixed) // (2 * n * itemsize)
        if max_td >= d:
            td = d
        else:
            td = max(512, (max_td // 512) * 512)    # multiple of 128 lanes
    grid = (pl.cdiv(d, td),)

    # vmem_limit ~1.5x actual need (no flat 32 MiB floor); `fixed` already
    # carries slack.
    need = 2 * n * td * itemsize + fixed
    vmem_limit = int(min(vmem_cap, max(need + need // 2, 8 << 20)))

    kernel = functools.partial(
        _cmmd_kernel, bs=bs, bt=bt, d=d, td=td,
        kernel_mul=float(kernel_mul), kernel_num=int(kernel_num),
        fix_sigma=fix_sigma)

    out = pl.pallas_call(
        kernel,
        out_shape=jax.ShapeDtypeStruct((1, 1), jnp.float32),
        grid_spec=pltpu.PrefetchScalarGridSpec(
            num_scalar_prefetch=0,
            grid=grid,
            in_specs=[
                pl.BlockSpec((n, td), lambda k: (0, k)),
                pl.BlockSpec((n, 1), lambda k: (0, 0)),
                pl.BlockSpec((1, n), lambda k: (0, 0)),
            ],
            out_specs=pl.BlockSpec((1, 1), lambda k: (0, 0),
                                   memory_space=pltpu.MemorySpace.SMEM),
            scratch_shapes=[
                pltpu.VMEM((n, n), jnp.float32),   # Gram accumulator
                pltpu.VMEM((n, 1), jnp.float32),   # squared-norm accumulator
            ],
        ),
        compiler_params=pltpu.CompilerParams(
            dimension_semantics=("arbitrary",),
            vmem_limit_bytes=vmem_limit),
    )(total, lab_col, lab_row)
    return out[0, 0]


def _cmmd_loss_ref(source, target, s_label, t_label,
                   kernel_mul=2.0, kernel_num=5, fix_sigma=None):
    """Pure-JAX reference mirroring the PyTorch forward exactly."""
    bs, bt = source.shape[0], target.shape[0]
    s = jax.nn.one_hot(s_label, NUM_CLASSES, dtype=jnp.float32)
    t = jax.nn.one_hot(t_label, NUM_CLASSES, dtype=jnp.float32)
    total = jnp.concatenate([source, target], axis=0).astype(jnp.float32)
    n = bs + bt
    diff = total[None, :, :] - total[:, None, :]
    l2 = jnp.sum(diff * diff, axis=2)
    bw = fix_sigma if fix_sigma else jnp.sum(l2) / (n * n - n)
    bw = bw / (kernel_mul ** (kernel_num // 2))
    kernels = sum(jnp.exp(-l2 / (bw * kernel_mul ** i)) for i in range(kernel_num))
    xx = kernels[:bs, :bs]
    yy = kernels[bs:, bs:]
    xy = kernels[:bs, bs:]
    return (jnp.mean(s @ s.T * xx) + jnp.mean(t @ t.T * yy)
            - jnp.mean(2.0 * (s @ t.T) * xy))


if __name__ == "__main__":
    key = jax.random.PRNGKey(0)
    k1, k2, k3, k4 = jax.random.split(key, 4)

    batch_s, batch_t, hidden = 2, 2, 32
    source = jax.random.normal(k1, (batch_s, hidden), dtype=jnp.float32)
    target = jax.random.normal(k2, (batch_t, hidden), dtype=jnp.float32)
    s_label = jax.random.randint(k3, (batch_s,), 0, NUM_CLASSES, dtype=jnp.int32)
    t_label = jax.random.randint(k4, (batch_t,), 0, NUM_CLASSES, dtype=jnp.int32)

    # Main path: single full-D block.
    loss = jax.block_until_ready(cmmd_loss(source, target, s_label, t_label))
    ref = jax.block_until_ready(_cmmd_loss_ref(source, target, s_label, t_label))
    assert jnp.allclose(loss, ref, rtol=1e-4, atol=1e-5), (loss, ref)

    # Ragged-tail path: force a 128-wide D tile so the last tile is partial
    # and exercises the in-kernel lane mask (replaces the old XLA-side pad).
    hidden2 = 300
    source2 = jax.random.normal(k1, (batch_s, hidden2), dtype=jnp.float32)
    target2 = jax.random.normal(k2, (batch_t, hidden2), dtype=jnp.float32)
    loss2 = jax.block_until_ready(
        cmmd_loss(source2, target2, s_label, t_label, tile_d=128))
    ref2 = jax.block_until_ready(
        _cmmd_loss_ref(source2, target2, s_label, t_label))
    assert jnp.allclose(loss2, ref2, rtol=1e-4, atol=1e-5), (loss2, ref2)

    print("KERNEL_OK")
</pallas_src>

<mosaic_0001>
module attributes {stable_mosaic.version = 11 : i64} {
  func.func @_cmmd_kernel(%arg0: i32, %arg1: memref<4x32xf32, #tpu.memory_space<vmem>>, %arg2: memref<4x1xi32, #tpu.memory_space<vmem>>, %arg3: memref<1x4xi32, #tpu.memory_space<vmem>>, %arg4: memref<1x1xf32, #tpu.memory_space<smem>>, %arg5: memref<4x4xf32, #tpu.memory_space<vmem>>, %arg6: memref<4x1xf32, #tpu.memory_space<vmem>>) attributes {dimension_semantics = [#tpu.dimension_semantics<arbitrary>], iteration_bounds = array<i64: 1>, scalar_prefetch = 0 : i64, scratch_operands = 2 : i64, tpu.core_type = #tpu.core_type<tc>, window_params = [{transform_indices = @transform_0, window_bounds = array<i64: 4, 32>}, {pipeline_mode = #tpu.pipeline_mode<synchronous>, transform_indices = @transform_1, window_bounds = array<i64: 4, 1>}, {pipeline_mode = #tpu.pipeline_mode<synchronous>, transform_indices = @transform_2, window_bounds = array<i64: 1, 4>}, {transform_indices = @transform_3, window_bounds = array<i64: 1, 1>}]} {
    %c0_i32 = arith.constant 0 : i32
    %0 = arith.cmpi eq, %arg0, %c0_i32 : i32
    %1 = arith.extui %0 : i1 to i32
    %c0_i32_0 = arith.constant 0 : i32
    %2 = arith.cmpi ne, %1, %c0_i32_0 : i32
    scf.if %2 {
      %cst_13 = arith.constant 0.000000e+00 : f32
      %17 = vector.broadcast %cst_13 : f32 to vector<4x4xf32>
      %c0_14 = arith.constant 0 : index
      %c0_15 = arith.constant 0 : index
      %18 = vector.load %arg5[%c0_14, %c0_15] : memref<4x4xf32, #tpu.memory_space<vmem>>, vector<4x4xf32>
      tpu.vector_store %arg5[%c0_14, %c0_15], %17 {strides = array<i32>} : memref<4x4xf32, #tpu.memory_space<vmem>>, vector<4x4xf32>,
      %cst_16 = arith.constant 0.000000e+00 : f32
      %19 = vector.broadcast %cst_16 : f32 to vector<4x1xf32>
      %c0_17 = arith.constant 0 : index
      %c0_18 = arith.constant 0 : index
      %20 = vector.load %arg6[%c0_17, %c0_18] : memref<4x1xf32, #tpu.memory_space<vmem>>, vector<4x1xf32>
      tpu.vector_store %arg6[%c0_17, %c0_18], %19 {strides = array<i32>} : memref<4x1xf32, #tpu.memory_space<vmem>>, vector<4x1xf32>,
    } else {
    }
    %c0 = arith.constant 0 : index
    %c0_1 = arith.constant 0 : index
    %3 = vector.load %arg1[%c0, %c0_1] : memref<4x32xf32, #tpu.memory_space<vmem>>, vector<4x32xf32>
    %c0_2 = arith.constant 0 : index
    %c0_3 = arith.constant 0 : index
    %4 = vector.load %arg5[%c0_2, %c0_3] : memref<4x4xf32, #tpu.memory_space<vmem>>, vector<4x4xf32>
    %cst = arith.constant dense<0.000000e+00> : vector<4x4xf32>
    %5 = tpu.matmul %3, %3, %cst {dimension_numbers = #tpu.dot_dimension_numbers<[1], [1], [0], [0], [0, 0, 1, 0], [], []>} : vector<4x32xf32>, vector<4x32xf32>, vector<4x4xf32> -> vector<4x4xf32>
    %6 = arith.addf %4, %5 : vector<4x4xf32>
    %c0_4 = arith.constant 0 : index
    %c0_5 = arith.constant 0 : index
    %7 = vector.load %arg5[%c0_4, %c0_5] : memref<4x4xf32, #tpu.memory_space<vmem>>, vector<4x4xf32>
    tpu.vector_store %arg5[%c0_4, %c0_5], %6 {strides = array<i32>} : memref<4x4xf32, #tpu.memory_space<vmem>>, vector<4x4xf32>,
    %c0_6 = arith.constant 0 : index
    %c0_7 = arith.constant 0 : index
    %8 = vector.load %arg6[%c0_6, %c0_7] : memref<4x1xf32, #tpu.memory_space<vmem>>, vector<4x1xf32>
    %9 = arith.mulf %3, %3 : vector<4x32xf32>
    %cst_8 = arith.constant dense<0.000000e+00> : vector<4xf32>
    %10 = vector.multi_reduction <add>, %9, %cst_8 [1] : vector<4x32xf32> to vector<4xf32>
    %11 = vector.shape_cast %10 : vector<4xf32> to vector<4x1xf32>
    %12 = arith.addf %8, %11 : vector<4x1xf32>
    %c0_9 = arith.constant 0 : index
    %c0_10 = arith.constant 0 : index
    %13 = vector.load %arg6[%c0_9, %c0_10] : memref<4x1xf32, #tpu.memory_space<vmem>>, vector<4x1xf32>
    tpu.vector_store %arg6[%c0_9, %c0_10], %12 {strides = array<i32>} : memref<4x1xf32, #tpu.memory_space<vmem>>, vector<4x1xf32>,
    %c0_i32_11 = arith.constant 0 : i32
    %14 = arith.cmpi eq, %arg0, %c0_i32_11 : i32
    %15 = arith.extui %14 : i1 to i32
    %c0_i32_12 = arith.constant 0 : i32
    %16 = arith.cmpi ne, %15, %c0_i32_12 : i32
    scf.if %16 {
      %c0_13 = arith.constant 0 : index
      %c0_14 = arith.constant 0 : index
      %17 = vector.load %arg5[%c0_13, %c0_14] : memref<4x4xf32, #tpu.memory_space<vmem>>, vector<4x4xf32>
      %c0_15 = arith.constant 0 : index
      %c0_16 = arith.constant 0 : index
      %18 = vector.load %arg6[%c0_15, %c0_16] : memref<4x1xf32, #tpu.memory_space<vmem>>, vector<4x1xf32>
      %19 = tpu.iota {dimensions = array<i32: 0>} : vector<4x4xi32>
      %20 = tpu.iota {dimensions = array<i32: 1>} : vector<4x4xi32>
      %21 = arith.cmpi eq, %19, %20 : vector<4x4xi32>
      %cst_17 = arith.constant 0.000000e+00 : f32
      %22 = vector.broadcast %cst_17 : f32 to vector<4x4xf32>
      %23 = arith.select %21, %17, %22 : vector<4x4xi1>, vector<4x4xf32>
      %cst_18 = arith.constant dense<0.000000e+00> : vector<4xf32>
      %24 = vector.multi_reduction <add>, %23, %cst_18 [0] : vector<4x4xf32> to vector<4xf32>
      %25 = vector.shape_cast %24 : vector<4xf32> to vector<1x4xf32>
      %26 = vector.broadcast %18 : vector<4x1xf32> to vector<4x4xf32>
      %27 = vector.broadcast %25 : vector<1x4xf32> to vector<4x4xf32>
      %28 = arith.addf %26, %27 : vector<4x4xf32>
      %cst_19 = arith.constant 2.000000e+00 : f32
      %29 = vector.broadcast %cst_19 : f32 to vector<4x4xf32>
      %30 = arith.mulf %29, %17 : vector<4x4xf32>
      %31 = arith.subf %28, %30 : vector<4x4xf32>
      %cst_20 = arith.constant 0.000000e+00 : f32
      %32 = vector.broadcast %cst_20 : f32 to vector<4x4xf32>
      %33 = arith.maximumf %31, %32 : vector<4x4xf32>
      %34 = vector.shape_cast %33 : vector<4x4xf32> to vector<1x4x4xf32>
      %cst_21 = arith.constant dense<0.000000e+00> : vector<1xf32>
      %35 = vector.multi_reduction <add>, %34, %cst_21 [1, 2] : vector<1x4x4xf32> to vector<1xf32>
      %36 = vector.shape_cast %35 : vector<1xf32> to vector<1x1x1xf32>
      %37 = vector.extract %36[0, 0, 0] : f32 from vector<1x1x1xf32>
      %cst_22 = arith.constant 1.200000e+01 : f32
      %38 = arith.divf %37, %cst_22 : f32
      %cst_23 = arith.constant 4.000000e+00 : f32
      %39 = arith.divf %38, %cst_23 : f32
      %c0_24 = arith.constant 0 : index
      %c0_25 = arith.constant 0 : index
      %40 = vector.load %arg2[%c0_24, %c0_25] : memref<4x1xi32, #tpu.memory_space<vmem>>, vector<4x1xi32>
      %c0_26 = arith.constant 0 : index
      %c0_27 = arith.constant 0 : index
      %41 = vector.load %arg3[%c0_26, %c0_27] : memref<1x4xi32, #tpu.memory_space<vmem>>, vector<1x4xi32>
      %42 = vector.broadcast %40 : vector<4x1xi32> to vector<4x4xi32>
      %43 = vector.broadcast %41 : vector<1x4xi32> to vector<4x4xi32>
      %44 = arith.cmpi eq, %42, %43 : vector<4x4xi32>
      %45 = arith.extui %44 : vector<4x4xi1> to vector<4x4xi32>
      %46 = arith.sitofp %45 : vector<4x4xi32> to vector<4x4xf32>
      %47 = tpu.iota {dimensions = array<i32: 0>} : vector<4x1xi32>
      %48 = tpu.iota {dimensions = array<i32: 1>} : vector<1x4xi32>
      %c2_i32 = arith.constant 2 : i32
      %49 = vector.broadcast %c2_i32 : i32 to vector<4x1xi32>
      %50 = arith.cmpi slt, %47, %49 : vector<4x1xi32>
      %51 = arith.extui %50 : vector<4x1xi1> to vector<4x1xi32>
      %52 = arith.sitofp %51 : vector<4x1xi32> to vector<4x1xf32>
      %c2_i32_28 = arith.constant 2 : i32
      %53 = vector.broadcast %c2_i32_28 : i32 to vector<1x4xi32>
      %54 = arith.cmpi slt, %48, %53 : vector<1x4xi32>
      %55 = arith.extui %54 : vector<1x4xi1> to vector<1x4xi32>
      %56 = arith.sitofp %55 : vector<1x4xi32> to vector<1x4xf32>
      %cst_29 = arith.constant 1.000000e+00 : f32
      %57 = vector.broadcast %cst_29 : f32 to vector<4x1xf32>
      %58 = arith.subf %57, %52 : vector<4x1xf32>
      %cst_30 = arith.constant 1.000000e+00 : f32
      %59 = vector.broadcast %cst_30 : f32 to vector<1x4xf32>
      %60 = arith.subf %59, %56 : vector<1x4xf32>
      %61 = vector.broadcast %52 : vector<4x1xf32> to vector<4x4xf32>
      %62 = vector.broadcast %56 : vector<1x4xf32> to vector<4x4xf32>
      %63 = arith.mulf %61, %62 : vector<4x4xf32>
      %cst_31 = arith.constant 2.500000e-01 : f32
      %64 = vector.broadcast %cst_31 : f32 to vector<4x4xf32>
      %65 = arith.mulf %63, %64 : vector<4x4xf32>
      %66 = vector.broadcast %58 : vector<4x1xf32> to vector<4x4xf32>
      %67 = vector.broadcast %60 : vector<1x4xf32> to vector<4x4xf32>
      %68 = arith.mulf %66, %67 : vector<4x4xf32>
      %cst_32 = arith.constant 2.500000e-01 : f32
      %69 = vector.broadcast %cst_32 : f32 to vector<4x4xf32>
      %70 = arith.mulf %68, %69 : vector<4x4xf32>
      %71 = arith.addf %65, %70 : vector<4x4xf32>
      %72 = vector.broadcast %52 : vector<4x1xf32> to vector<4x4xf32>
      %73 = vector.broadcast %60 : vector<1x4xf32> to vector<4x4xf32>
      %74 = arith.mulf %72, %73 : vector<4x4xf32>
      %cst_33 = arith.constant 5.000000e-01 : f32
      %75 = vector.broadcast %cst_33 : f32 to vector<4x4xf32>
      %76 = arith.mulf %74, %75 : vector<4x4xf32>
      %77 = arith.subf %71, %76 : vector<4x4xf32>
      %78 = arith.mulf %46, %77 : vector<4x4xf32>
      %cst_34 = arith.constant 1.600000e+01 : f32
      %79 = arith.mulf %39, %cst_34 : f32
      %cst_35 = arith.constant -1.000000e+00 : f32
      %80 = arith.divf %cst_35, %79 : f32
      %81 = vector.broadcast %80 : f32 to vector<4x4xf32>
      %82 = arith.mulf %33, %81 : vector<4x4xf32>
      %83 = math.exp %82 : vector<4x4xf32>
      %84 = arith.mulf %83, %78 : vector<4x4xf32>
      %85 = arith.mulf %83, %83 : vector<4x4xf32>
      %86 = arith.mulf %85, %78 : vector<4x4xf32>
      %87 = arith.addf %84, %86 : vector<4x4xf32>
      %88 = arith.mulf %85, %85 : vector<4x4xf32>
      %89 = arith.mulf %88, %78 : vector<4x4xf32>
      %90 = arith.addf %87, %89 : vector<4x4xf32>
      %91 = arith.mulf %88, %88 : vector<4x4xf32>
      %92 = arith.mulf %91, %78 : vector<4x4xf32>
      %93 = arith.addf %90, %92 : vector<4x4xf32>
      %94 = arith.mulf %91, %91 : vector<4x4xf32>
      %95 = arith.mulf %94, %78 : vector<4x4xf32>
      %96 = arith.addf %93, %95 : vector<4x4xf32>
      %97 = vector.shape_cast %96 : vector<4x4xf32> to vector<1x4x4xf32>
      %cst_36 = arith.constant dense<0.000000e+00> : vector<1xf32>
      %98 = vector.multi_reduction <add>, %97, %cst_36 [1, 2] : vector<1x4x4xf32> to vector<1xf32>
      %99 = vector.shape_cast %98 : vector<1xf32> to vector<1x1x1xf32>
      %100 = vector.extract %99[0, 0, 0] : f32 from vector<1x1x1xf32>
      %c0_37 = arith.constant 0 : index
      %c0_38 = arith.constant 0 : index
      %101 = memref.load %arg4[%c0_37, %c0_38] : memref<1x1xf32, #tpu.memory_space<smem>>
      memref.store %100, %arg4[%c0_37, %c0_38] : memref<1x1xf32, #tpu.memory_space<smem>>
    } else {
    }
    return
  }
  func.func @transform_0(%arg0: i32) -> (i32, i32) {
    %c0_i32 = arith.constant 0 : i32
    %c0_i32_0 = arith.constant 0 : i32
    return %c0_i32, %arg0 : i32, i32
  }
  func.func @transform_1(%arg0: i32) -> (i32, i32) {
    %c0_i32 = arith.constant 0 : i32
    %c0_i32_0 = arith.constant 0 : i32
    %c0_i32_1 = arith.constant 0 : i32
    return %c0_i32, %c0_i32_0 : i32, i32
  }
  func.func @transform_2(%arg0: i32) -> (i32, i32) {
    %c0_i32 = arith.constant 0 : i32
    %c0_i32_0 = arith.constant 0 : i32
    %c0_i32_1 = arith.constant 0 : i32
    return %c0_i32, %c0_i32_0 : i32, i32
  }
  func.func @transform_3(%arg0: i32) -> (i32, i32) {
    %c0_i32 = arith.constant 0 : i32
    %c0_i32_0 = arith.constant 0 : i32
    %c0_i32_1 = arith.constant 0 : i32
    return %c0_i32, %c0_i32_0 : i32, i32
  }
}

</mosaic_0001>

<bundles_post_ra>
// kernel: tpu_custom_call.1
= control target key start
LH: loop header
LB: loop body
LE: loop exit
PB: predicated region body
PF: predicated region fallthrough
CT: control target
= control target key end

     0   :  { %vm104_vm0 = vcmask 257024   ;;  %vm25_vm1 = vcmask 261120   ;;  %v271_v2 = vmov 0.0   ;;  %vm272_vm2 = vmmov 0   ;;  %s328_s0 = inlined_call_operand.vmem [shape: f32[4,32], index: 0, kind: input, shape index: {}]   ;;  %s329_s1 = inlined_call_operand.vmem [shape: s32[4,1], index: 1, kind: input, shape index: {}]   ;;  %s330_s2 = inlined_call_operand.vmem [shape: s32[1,4], index: 2, kind: input, shape index: {}]   ;;  %s331_s3 = inlined_call_operand.hbm [shape: f32[1,1], index: 3, kind: output, shape index: {}]  }
   0x1   :  { %v23_v0 = vld [vmem:[%s328_s0] sm:$0xf]  ;;  %238 = vmatprep.subr.mxu0 %v271_v2  ;;  %240 = vmatprep.mubr.msk.f32.mxu0 %vm272_vm2, %v271_v2 }
   0x2   :  { %v103_v1 = vmul.f32 %v23_v0, %v23_v0 }
   0x3   :  { %8 = vsyncpa [#allocation5], 0  ;;  %239 = vmatpush3.xpose.msk.msra.mxu0 %vm25_vm1, %v23_v0  ;;  %vm21_vm3 = vcmask 3072   ;;  %v273_v4 = vmov 0   ;;  %vm19_vm4 = vcmask 27648   ;;  %v116_v13 = vlaneseq  ;;  %s259_s24 = scalar_lea.hbm %s331_s3, 16 }
   0x4   :  { %v105_v3 = vsel %vm104_vm0, %v103_v1, 0.0  ;;  %22 = vst.msk [vmem:[#allocation3] sm:$0xf] %vm21_vm3, %v271_v2  ;;  %253 = vset.pattern.permute.xlu0 %v273_v4  ;;  %254 = vset.pattern.permute.xlu1 %v273_v4  ;;  %v154_v31 = vld [vmem:[%s329_s1] sm:$0xf]  ;;  %p260_p0 = scmp.ne.s32.totalorder %s331_s3, %s259_s24  ;;  %p263_p1 = scmp.lt.u32.totalorder %s259_s24, %s331_s3 }
   0x5   :  { %106 = vadd.xlane.f32.xlu0 %v105_v3  ;;  %20 = vst.msk [vmem:[#allocation2] sm:$0xf] %vm19_vm4, %v271_v2  ;;  %v117_v14 = vshrl.u32 %v116_v13, 7  ;;  %v119_v15 = vand.u32 127, %v116_v13  ;;  %v232_v53 = vld [vmem:[%s330_s2] ss:$0 sm:$0xff] }
   0x6   :  { %241 = vmatmul.mubr.msk.f32.vlgmr.msra.gmra.mrb[0].mxu0 %vm25_vm1, %v23_v0  ;;  %p265_p2 = pnand %p263_p1, %p260_p0 }
   0x7   :  { %vm120_vm5 = vcmp.eq.s32.totalorder %v117_v14, %v119_v15  ;;  %vm166_vm6 = vcmp.lt.s32.totalorder %v117_v14, 2  ;;  %vm169_vm7 = vcmp.lt.s32.totalorder %v119_v15, 2 }
   0x8   :  { %v234_v41 = vsel %vm166_vm6, 1.0, %v271_v2  ;;  %v235_v42 = vsel %vm169_vm7, 1.0, %v271_v2 }
   0x9   :  { %v172_v43 = vsub.f32 1.0, %v234_v41  ;;  %v173_v44 = vsub.f32 1.0, %v235_v42  ;;  %v174_v45 = vmul.f32 %v235_v42, %v234_v41 }
   0xb   :  { %v102_v5 = vld [vmem:[#allocation3] sm:$0xf]  ;;  %v176_v46 = vmul.f32 %v173_v44, %v172_v43  ;;  %v175_v49 = vmul.f32 0.25, %v174_v45  ;;  %v179_v51 = vmul.f32 %v234_v41, %v173_v44 }
   0xc   :  { %v24_v9 = vld [vmem:[#allocation2] sm:$0xf] }
   0xd   :  { %v177_v50 = vmul.f32 0.25, %v176_v46  ;;  %v180_v56 = vmul.f32 0.5, %v179_v51 }
   0xf   :  { %v178_v55 = vadd.f32 %v177_v50, %v175_v49 }
  0x11   :  { %v181_v57 = vsub.f32 %v178_v55, %v180_v56 }
  0x92   :  { %v107_v6 = vpop.xlane.xlu0 %106 }
  0x93   :  { %v108_v7 = vadd.f32 %v107_v6, %v102_v5 }
  0x95   :  { %110 = vst.msk [vmem:[#allocation3] sm:$0xf] %vm21_vm3, %v108_v7 }
  0x9c   :  { %v115_v8 = vld [vmem:[#allocation3] sm:$0xf] }
  0x9d   :  { %131 = vperm.xlu0 %253, %v115_v8  }
  0xd9   :  { %v95_v10 = vpop.f32.mrb[0].mxu0 }
  0xda   :  { %v99_v11 = vadd.f32 %v95_v10, %v24_v9  ;;  %v242_v12 = vpop.f32.mrb[1].mxu0 }
  0xdc   :  { %101 = vst.msk [vmem:[#allocation2] sm:$0xf] %vm19_vm4, %v99_v11 }
  0xe3   :  { %v114_v16 = vld [vmem:[#allocation2] sm:$0xf] }
  0xe4   :  { %v121_v17 = vsel %vm120_vm5, %v114_v16, 0.0  ;;  %v135_v27 = vmul.f32 2.0, %v114_v16 }
  0xe5   :  { %v122_v18 = vsel %vm19_vm4, %v121_v17, 0.0 }
  0xe6   :  { %v123_v19 = vrot.slane %v122_v18, 4 }
  0xe8   :  { %v124_v20 = vadd.f32 %v123_v19, %v122_v18 }
  0xea   :  { %v125_v21 = vrot.slane %v124_v20, 2 }
  0xec   :  { %v126_v22 = vadd.f32 %v125_v21, %v124_v20 }
  0xee   :  { %v127_v23 = vrot.slane %v126_v22, 1 }
  0xf0   :  { %v128_v24 = vadd.f32 %v127_v23, %v126_v22 }
 0x11c   :  { %v132_v25 = vpop.permute.xlu0 %131 }
 0x11d   :  { %v134_v26 = vadd.f32 %v132_v25, %v128_v24 }
 0x11f   :  { %v136_v28 = vsub.f32 %v134_v26, %v135_v27 }
 0x121   :  { %v137_v29 = vmax.f32 %v136_v28, 0.0 }
 0x123   :  { %v138_v30 = vsel %vm19_vm4, %v137_v29, 0.0 }
 0x124   :  { %139 = vadd.xlane.f32.xlu1 %v138_v30 }
 0x135   :  { %157 = vperm.xlu1 %254, %v154_v31  }
 0x1b1   :  { %v140_v32 = vpop.xlane.xlu1 %139 }
 0x1b2   :  { %v141_v33 = vrot.slane %v140_v32, 4 }
 0x1b4   :  { %v142_v34 = vadd.f32 %v141_v33, %v140_v32 }
 0x1b5   :  { %v158_v54 = vpop.permute.xlu1 %157 }
 0x1b6   :  { %v143_v35 = vrot.slane %v142_v34, 2  ;;  %vm163_vm8 = vcmp.eq.s32.totalorder %v158_v54, %v232_v53 }
 0x1b7   :  { %v233_v58 = vsel %vm163_vm8, 1.0, %v271_v2 }
 0x1b8   :  { %v144_v36 = vadd.f32 %v143_v35, %v142_v34  ;;  %v182_v59 = vmul.f32 %v233_v58, %v181_v57 }
 0x1ba   :  { %v145_v37 = vrot.slane %v144_v36, 1 }
 0x1bc   :  { %v146_v38 = vadd.f32 %v145_v37, %v144_v36 }
 0x1be   :  { %243 = vpush %v146_v38 }
 0x1ef   :  { %s244_s15 = spop %243 }
 0x1f0   :  { %s150_s16 = smul.f32 0.083333336, %s244_s15 }
 0x1f2   :  { %s153_s17 = smul.f32 0.25, %s150_s16 }
 0x1f4   :  { %s183_s18 = smul.f32 16.0, %s153_s17 }
 0x1f6   :  { %v184_v39 = vstv %s183_s18 }
 0x1f7   :  { %255 = vrcp.f32 %v184_v39 }
 0x201   :  { %v256_v40 = vpop.eup %255 }
 0x202   :  { %245 = vpush %v256_v40 }
 0x233   :  { %s246_s1 = spop %245 }
 0x234   :  { %s187_s19 = smul.f32 -1.0, %s246_s1 }
 0x236   :  { %v188_v47 = vstv %s187_s19 }
 0x237   :  { %v189_v48 = vmul.f32 %v188_v47, %v137_v29 }
 0x239   :  { %v190_v52 = vmul.f32 1.442695, %v189_v48 }
 0x23b   :  { %257 = vpow2.f32 %v190_v52 }
 0x245   :  { %v258_v60 = vpop.eup %257 }
 0x246   :  { %v193_v61 = vmul.f32 %v258_v60, %v258_v60  ;;  %v192_v62 = vmul.f32 %v258_v60, %v182_v59 }
 0x248   :  { %v194_v63 = vmul.f32 %v193_v61, %v182_v59  ;;  %v196_v0 = vmul.f32 %v193_v61, %v193_v61 }
 0x24a   :  { %v195_v1 = vadd.f32 %v194_v63, %v192_v62  ;;  %v197_v3 = vmul.f32 %v196_v0, %v182_v59  ;;  %v199_v4 = vmul.f32 %v196_v0, %v196_v0 }
 0x24c   :  { %v198_v5 = vadd.f32 %v197_v3, %v195_v1  ;;  %v200_v6 = vmul.f32 %v199_v4, %v182_v59  ;;  %v202_v7 = vmul.f32 %v199_v4, %v199_v4 }
 0x24e   :  { %v201_v8 = vadd.f32 %v200_v6, %v198_v5  ;;  %v203_v9 = vmul.f32 %v202_v7, %v182_v59 }
 0x250   :  { %v204_v10 = vadd.f32 %v203_v9, %v201_v8 }
 0x252   :  { %v205_v11 = vsel %vm19_vm4, %v204_v10, 0.0 }
 0x253   :  { %206 = vadd.xlane.f32.xlu1 %v205_v11 }
 0x2e0   :  { %v207_v12 = vpop.xlane.xlu1 %206 }
 0x2e1   :  { %v208_v2 = vrot.slane %v207_v12, 4 }
 0x2e3   :  { %v209_v13 = vadd.f32 %v208_v2, %v207_v12 }
 0x2e5   :  { %v210_v14 = vrot.slane %v209_v13, 2 }
 0x2e7   :  { %v211_v15 = vadd.f32 %v210_v14, %v209_v13 }
 0x2e9   :  { %v212_v16 = vrot.slane %v211_v15, 1 }
 0x2eb   :  { %v213_v17 = vadd.f32 %v212_v16, %v211_v15 }
 0x2ed   :  { %247 = vpush %v213_v17 }
 0x31e   :  { %s248_s2 = spop %247 }
 0x31f   :  { %216 = sst [smem:[#allocation4]] %s248_s2 }
 0x320   :  { %268 = shalt.err (!%p265_p2)
}
 0x321   :  { %s274_s29 = smov [#allocation4]  }
 0x322   :  { %224 = dma.smem_to_hbm %s274_s29, 16, %s331_s3, [#allocation5]  }
 0x323   :  { %269 = dma.done.wait [#allocation5], 16  }
 0x324   :  { %270 = vsyncadd [#allocation5], 4294967280 }
 0x325   :  { %228 = sfence }
 0x326   :  { %229 = vsyncpa [#allocation5], 1 }

</bundles_post_ra>
